<compile_context>
chip_gen: v7x
topology: tpu7x:2x2x1
jax: 0.10.0
libtpu: 0.0.40
codegen_flags: <defaults>
</compile_context>

<pallas_src>
import jax
import jax.numpy as jnp
from jax.experimental import pallas as pl
from jax.experimental.pallas import tpu as pltpu


ROWS_PER_BLOCK = 256      # output rows per grid step (multiple of 8)


# ---------------------------------------------------------------------------
# Gather kernel: compaction driven by a scalar-prefetched permutation + count
# ---------------------------------------------------------------------------
def _gather_kernel(perm_ref, cnt_ref, data_ref, out_ref):
    """Compact permuted rows of `data_ref` into `out_ref`.

    perm_ref : SMEM (N_pad,) int32 -- perm[g] = source row of output row g (g < cnt)
    cnt_ref  : SMEM (1,)     int32 -- number of valid rows
    data_ref : VMEM (N_pad, W) f32 -- resident fused features|coords slab
    out_ref  : VMEM (R, W)     f32 -- this grid step's output tile
    """
    rows = out_ref.shape[0]
    base = pl.program_id(0) * rows
    cnt = cnt_ref[0]
    nvalid = jnp.clip(cnt - base, 0, rows)            # valid rows in this tile

    # Tiles that contain padding: a single hoisted memset (not per-row zeros),
    # then the valid prefix is overwritten below.  Fully-valid tiles skip it;
    # fully-padded tiles do only this.
    @pl.when(nvalid < rows)
    def _():
        out_ref[...] = jnp.zeros_like(out_ref)

    # TODO(synk): per-row dynamic loads burn vld/scalar slots; a whole
    # sublane-group gather (or an HBM DMA-gather fallback) would cut that ~8x
    # for very large N.
    def body(r, carry):
        idx = perm_ref[base + r]                      # SMEM scalar read
        out_ref[pl.ds(r, 1), :] = data_ref[pl.ds(idx, 1), :]
        return carry

    jax.lax.fori_loop(0, nvalid, body, 0)


def _crop_gather(data, perm, count, rows_per_block):
    n_pad, w = data.shape
    return pl.pallas_call(
        _gather_kernel,
        out_shape=jax.ShapeDtypeStruct((n_pad, w), data.dtype),
        grid_spec=pltpu.PrefetchScalarGridSpec(
            num_scalar_prefetch=2,                    # perm, count -> SMEM
            grid=(n_pad // rows_per_block,),
            in_specs=[
                # Fused slab stays VMEM-resident across the grid (constant
                # index map -> fetched once, no per-step re-DMA).
                # TODO(synk): once N*W*4 bytes approaches VMEM (earliest cliff:
                # v7x's 64 MiB) or perm overflows SMEM, switch to a
                # memory_space=pl.ANY + double-buffered make_async_copy
                # row-gather from HBM instead of full residency.
                pl.BlockSpec((n_pad, w), lambda t, perm, cnt: (0, 0)),
            ],
            out_specs=pl.BlockSpec(
                (rows_per_block, w), lambda t, perm, cnt: (t, 0)),
        ),
        compiler_params=pltpu.CompilerParams(
            dimension_semantics=("parallel",),        # disjoint tiles -> 2 TCs on v7x
            vmem_limit_bytes=48 * 1024 * 1024,
        ),
    )(perm, count, data)


# ---------------------------------------------------------------------------
# SparseCrop forward
# ---------------------------------------------------------------------------
@jax.jit
def sparse_crop(features, coords, loc_min, loc_max):
    """Returns (out_features, out_coords, count).

    Rows [0, count) hold the cropped points in original order; rows >= count
    are zero padding.
    """
    n, c = features.shape
    r = ROWS_PER_BLOCK

    # --- mask / count / stable partition: plain jnp, fused by XLA -----------
    xyz = coords[:, :3]
    flag = jnp.all((xyz >= loc_min) & (xyz < loc_max), axis=-1)
    count = jnp.sum(flag).astype(jnp.int32)
    fi = flag.astype(jnp.int32)
    # stable partition: destination index per source row, then invert by scatter
    dest = jnp.where(flag, jnp.cumsum(fi) - 1, count + jnp.cumsum(1 - fi) - 1)
    perm = jnp.zeros((n,), jnp.int32).at[dest].set(
        jnp.arange(n, dtype=jnp.int32))               # output row -> source row

    # --- fuse features and bitcast(coords) into one slab gathered once ------
    data = jnp.concatenate(
        [features, jax.lax.bitcast_convert_type(coords, jnp.float32)], axis=-1)

    # pad the row count to a multiple of the block size (padded rows are never
    # indexed because the kernel only gathers rows g < count)
    n_pad = r * pl.cdiv(n, r)
    if n_pad != n:
        data = jnp.pad(data, ((0, n_pad - n), (0, 0)))
        perm = jnp.pad(perm, (0, n_pad - n))

    out = _crop_gather(data, perm, count.reshape(1), r)[:n]
    out_features = out[:, :c]
    out_coords = jax.lax.bitcast_convert_type(out[:, c:], jnp.int32)
    # TODO(synk): PyTorch returns variable-length tensors; static-shape TPU
    # kernels return a padded compaction + count instead.
    return out_features, out_coords, count


if __name__ == "__main__":
    key = jax.random.PRNGKey(0)
    k_xyz, k_b, k_f = jax.random.split(key, 3)

    N, C = 1000, 32                                  # deliberately not a multiple of 256
    xyz = jax.random.randint(k_xyz, (N, 3), 0, 16, dtype=jnp.int32)
    batch = jax.random.randint(k_b, (N, 1), 0, 2, dtype=jnp.int32)
    coords = jnp.concatenate([xyz, batch], axis=-1)                 # (N, 4) int32
    features = jax.random.normal(k_f, (N, C), dtype=jnp.float32)    # (N, C) f32

    loc_min = jnp.array([2, 2, 2], dtype=jnp.int32)
    loc_max = jnp.array([12, 12, 12], dtype=jnp.int32)

    out_feat, out_coords, count = sparse_crop(features, coords, loc_min, loc_max)
    jax.block_until_ready((out_feat, out_coords, count))

    # Pure-JAX reference (matches the PyTorch spcrop semantics).
    flag_ref = jnp.all((coords[:, :3] >= loc_min) & (coords[:, :3] < loc_max), axis=-1)
    cnt_ref = int(flag_ref.sum())
    feat_ref = features[flag_ref]
    coords_ref = coords[flag_ref]

    cnt = int(count)
    assert cnt == cnt_ref, (cnt, cnt_ref)
    assert jnp.allclose(out_feat[:cnt], feat_ref), "feature mismatch"
    assert jnp.array_equal(out_coords[:cnt], coords_ref), "coords mismatch"
    assert jnp.all(out_feat[cnt:] == 0) and jnp.all(out_coords[cnt:] == 0), \
        "padding not zero"

    print("KERNEL_OK")
</pallas_src>

<mosaic_0001>
module attributes {stable_mosaic.version = 11 : i64} {
  func.func @_gather_kernel(%arg0: i32, %arg1: memref<1024xi32, #tpu.memory_space<smem>>, %arg2: memref<1xi32, #tpu.memory_space<smem>>, %arg3: memref<1024x36xf32, #tpu.memory_space<vmem>>, %arg4: memref<256x36xf32, #tpu.memory_space<vmem>>) attributes {dimension_semantics = [#tpu.dimension_semantics<parallel>], iteration_bounds = array<i64: 4>, scalar_prefetch = 2 : i64, scratch_operands = 0 : i64, tpu.core_type = #tpu.core_type<tc>, window_params = [{pipeline_mode = #tpu.pipeline_mode<synchronous>, transform_indices = @transform_0, window_bounds = array<i64: 1024, 36>}, {transform_indices = @transform_1, window_bounds = array<i64: 256, 36>}]} {
    %c256_i32 = arith.constant 256 : i32
    %0 = arith.muli %arg0, %c256_i32 : i32
    %c0 = arith.constant 0 : index
    %1 = memref.load %arg2[%c0] : memref<1xi32, #tpu.memory_space<smem>>
    %2 = arith.subi %1, %0 : i32
    %c0_i32 = arith.constant 0 : i32
    %c256_i32_0 = arith.constant 256 : i32
    %3 = arith.maxsi %c0_i32, %2 : i32
    %4 = arith.minsi %c256_i32_0, %3 : i32
    %c256_i32_1 = arith.constant 256 : i32
    %5 = arith.cmpi slt, %4, %c256_i32_1 : i32
    %6 = arith.extui %5 : i1 to i32
    %c0_i32_2 = arith.constant 0 : i32
    %7 = arith.cmpi ne, %6, %c0_i32_2 : i32
    scf.if %7 {
      %cst = arith.constant 0.000000e+00 : f32
      %10 = vector.broadcast %cst : f32 to vector<256x36xf32>
      %c0_5 = arith.constant 0 : index
      %c0_6 = arith.constant 0 : index
      %11 = vector.load %arg4[%c0_5, %c0_6] : memref<256x36xf32, #tpu.memory_space<vmem>>, vector<256x36xf32>
      tpu.vector_store %arg4[%c0_5, %c0_6], %10 {strides = array<i32>} : memref<256x36xf32, #tpu.memory_space<vmem>>, vector<256x36xf32>,
    } else {
    }
    %c0_i32_3 = arith.constant 0 : i32
    %c0_i32_4 = arith.constant 0 : i32
    %8 = arith.subi %4, %c0_i32_4 : i32
    %9 = arith.addi %c0_i32_4, %8 : i32
    %c1_i32 = arith.constant 1 : i32
    scf.for %arg5 = %c0_i32_4 to %9 step %c1_i32  : i32 {
      %10 = arith.addi %0, %arg5 : i32
      %11 = arith.index_cast %10 : i32 to index
      %12 = memref.load %arg1[%11] : memref<1024xi32, #tpu.memory_space<smem>>
      %13 = arith.index_cast %12 : i32 to index
      %c0_5 = arith.constant 0 : index
      %14 = vector.load %arg3[%13, %c0_5] : memref<1024x36xf32, #tpu.memory_space<vmem>>, vector<1x36xf32>
      %15 = arith.index_cast %arg5 : i32 to index
      %c0_6 = arith.constant 0 : index
      %16 = vector.load %arg4[%15, %c0_6] : memref<256x36xf32, #tpu.memory_space<vmem>>, vector<1x36xf32>
      tpu.vector_store %arg4[%15, %c0_6], %14 {strides = array<i32>} : memref<256x36xf32, #tpu.memory_space<vmem>>, vector<1x36xf32>,
    }
    return
  }
  func.func @transform_0(%arg0: i32, %arg1: memref<1024xi32, #tpu.memory_space<smem>>, %arg2: memref<1xi32, #tpu.memory_space<smem>>) -> (i32, i32) {
    %c0_i32 = arith.constant 0 : i32
    %c0_i32_0 = arith.constant 0 : i32
    %c0_i32_1 = arith.constant 0 : i32
    return %c0_i32, %c0_i32_0 : i32, i32
  }
  func.func @transform_1(%arg0: i32, %arg1: memref<1024xi32, #tpu.memory_space<smem>>, %arg2: memref<1xi32, #tpu.memory_space<smem>>) -> (i32, i32) {
    %c0_i32 = arith.constant 0 : i32
    %c0_i32_0 = arith.constant 0 : i32
    return %arg0, %c0_i32 : i32, i32
  }
}

</mosaic_0001>

<bundles_post_ra>
// kernel: sparse_crop.1
= control target key start
LH: loop header
LB: loop body
LE: loop exit
PB: predicated region body
PF: predicated region fallthrough
CT: control target
= control target key end

     0   :  { %s402_s0 = inlined_call_operand.vmem [shape: s32[1024], index: 0, kind: input, shape index: {}]   ;;  %s403_s1 = inlined_call_operand.<no memory space> [shape: s32[1], index: 1, kind: input, shape index: {}]   ;;  %s404_s2 = inlined_call_operand.vmem [shape: f32[1024,36], index: 2, kind: input, shape index: {}]   ;;  %s405_s3 = inlined_call_operand.vmem [shape: f32[1024,36], index: 3, kind: output, shape index: {}]  }
   0x1   :  { %s8_s14 = sshll.u32 %s402_s0, 4  ;;  %12 = sst [smem:[#allocation4]] %s403_s1  ;;  %s9_s14 = int_to_ptr.vmem [resolvable:$true] %s8_s14 }
   0x2   :  { %s251_s17 = scalar_lea.vmem %s9_s14, 128  ;;  %p256_p1 = scmp.lt.s32.totalorder %s9_s14, %s9_s14 }
   0x3   :  { %p252_p0 = scmp.ne.s32.totalorder %s9_s14, %s251_s17  ;;  %p257_p2 = scmp.lt.s32.totalorder %s251_s17, %s251_s17 }
   0x5   :  { %p258_p3 = por %p257_p2, %p256_p1 }
   0x7   :  { %p259_p4 = pnand %p258_p3, %p252_p0 }
   0x9   :  { %262 = shalt.err (!%p259_p4)  }
   0xa   :  { %s281_s18 = smov [#allocation3]  }
   0xb   :  { %11 = dma.vmem_to_smem %s9_s14, 128, %s281_s18, [#allocation2] }
   0xc   :  { %271 = dma.done.wait [#allocation2], 128 }
   0xd   :  { %272 = vsyncadd [#allocation2], 4294967168 }
   0xe   :  { %14 = sfence }
   0xf   :  { %s309_s19 = smov 0  }
  0x10 LB: > { %s215_s0 = sadd.s32 4294967295, %s275_s19   ;;  %p218_p5 = scmp.ge.s32.totalorder %s275_s19, 1  ;;  %s275_s19 = sphi %s309_s19, %s20_s19  }
  0x11   : > { %p86_p6 = scmp.lt.s32.totalorder %s275_s19, 5 }
  0x13   : > { %p87_p7 = pnand %p218_p5, %p86_p6 }
  0x14   : > { %s219_s1 = sshll.u32 (!%p87_p7), %s215_s0, 5  ;;  %s108_s20 = sld [smem:[#allocation4]] (!%p87_p7) }
  0x15   : > { %90 = sbr.rel (%p87_p7) target bundleno = 69 (0x45), region = 24  ;;  %p102_p8 = scmp.lt.s32.totalorder (!%p87_p7), %s219_s1, 127 }
  0x16   : > { %s317_s21 = sshll.u32 (!%p87_p7), %s215_s0, 8 }
  0x1a   : > { %s109_s26 = ssub.s32 (!%p87_p7), %s108_s20, %s317_s21 }
  0x1b   : > { %p110_p9 = scmp.gt.s32.totalorder (!%p87_p7), %s109_s26, 0  ;;  %p222_p10 = scmp.lt.s32.totalorder (!%p87_p7), %s109_s26, 256 }
  0x1c   : > { %s407_s1 = smov (!%p102_p8, %s219_s1), 127 }
  0x1d   : > { %s220_s22 = sshll.u32 %s407_s1, 3  ;;  %s409_s26 = smov (!%p110_p9, %s109_s26), 0 }
  0x1e   : > { %s322_s25 = scalar_lea.vmem %s405_s3, %s220_s22  ;;  %s411_s26 = smov (!%p222_p10, %s409_s26), 256 }
  0x1f   : > { %p227_p11 = scmp.ge.s32.totalorder %s411_s26, 256 }
  0x20   : > { %vm118_vm0 = vcmask (!%p227_p11), 293888   ;;  %v282_v0 = vmov (!%p227_p11), 0.0  }
  0x21   : > { %117 = sbr.rel (%p227_p11) target bundleno = 49 (0x31), region = 28  ;;  %119 = vst.msk [vmem:[%s322_s25] sm:$0xff] (!%p227_p11), %vm118_vm0, %v282_v0  ;;  %120 = vst.msk [vmem:[%s322_s25 + $0x8] sm:$0xff] (!%p227_p11), %vm118_vm0, %v282_v0 }
  0x22   : > { %121 = vst.msk [vmem:[%s322_s25 + $0x10] sm:$0xff] (!%p227_p11), %vm118_vm0, %v282_v0  ;;  %122 = vst.msk [vmem:[%s322_s25 + $0x18] sm:$0xff] (!%p227_p11), %vm118_vm0, %v282_v0 }
  0x23   : > { %123 = vst.msk [vmem:[%s322_s25 + $0x20] sm:$0xff] (!%p227_p11), %vm118_vm0, %v282_v0  ;;  %124 = vst.msk [vmem:[%s322_s25 + $0x28] sm:$0xff] (!%p227_p11), %vm118_vm0, %v282_v0 }
  0x24   : > { %125 = vst.msk [vmem:[%s322_s25 + $0x30] sm:$0xff] (!%p227_p11), %vm118_vm0, %v282_v0  ;;  %126 = vst.msk [vmem:[%s322_s25 + $0x38] sm:$0xff] (!%p227_p11), %vm118_vm0, %v282_v0 }
  0x25   : > { %127 = vst.msk [vmem:[%s322_s25 + $0x40] sm:$0xff] (!%p227_p11), %vm118_vm0, %v282_v0  ;;  %128 = vst.msk [vmem:[%s322_s25 + $0x48] sm:$0xff] (!%p227_p11), %vm118_vm0, %v282_v0 }
  0x26   : > { %129 = vst.msk [vmem:[%s322_s25 + $0x50] sm:$0xff] (!%p227_p11), %vm118_vm0, %v282_v0  ;;  %130 = vst.msk [vmem:[%s322_s25 + $0x58] sm:$0xff] (!%p227_p11), %vm118_vm0, %v282_v0 }
  0x27   : > { %131 = vst.msk [vmem:[%s322_s25 + $0x60] sm:$0xff] (!%p227_p11), %vm118_vm0, %v282_v0  ;;  %132 = vst.msk [vmem:[%s322_s25 + $0x68] sm:$0xff] (!%p227_p11), %vm118_vm0, %v282_v0 }
  0x28   : > { %133 = vst.msk [vmem:[%s322_s25 + $0x70] sm:$0xff] %vm118_vm0, %v282_v0  ;;  %134 = vst.msk [vmem:[%s322_s25 + $0x78] sm:$0xff] %vm118_vm0, %v282_v0 }
  0x29   : > { %135 = vst.msk [vmem:[%s322_s25 + $0x80] sm:$0xff] %vm118_vm0, %v282_v0  ;;  %136 = vst.msk [vmem:[%s322_s25 + $0x88] sm:$0xff] %vm118_vm0, %v282_v0 }
  0x2a   : > { %137 = vst.msk [vmem:[%s322_s25 + $0x90] sm:$0xff] %vm118_vm0, %v282_v0  ;;  %138 = vst.msk [vmem:[%s322_s25 + $0x98] sm:$0xff] %vm118_vm0, %v282_v0 }
  0x2b   : > { %139 = vst.msk [vmem:[%s322_s25 + $0xa0] sm:$0xff] %vm118_vm0, %v282_v0  ;;  %140 = vst.msk [vmem:[%s322_s25 + $0xa8] sm:$0xff] %vm118_vm0, %v282_v0 }
  0x2c   : > { %141 = vst.msk [vmem:[%s322_s25 + $0xb0] sm:$0xff] %vm118_vm0, %v282_v0  ;;  %142 = vst.msk [vmem:[%s322_s25 + $0xb8] sm:$0xff] %vm118_vm0, %v282_v0 }
  0x2d   : > { %143 = vst.msk [vmem:[%s322_s25 + $0xc0] sm:$0xff] %vm118_vm0, %v282_v0  ;;  %144 = vst.msk [vmem:[%s322_s25 + $0xc8] sm:$0xff] %vm118_vm0, %v282_v0 }
  0x2e   : > { %145 = vst.msk [vmem:[%s322_s25 + $0xd0] sm:$0xff] %vm118_vm0, %v282_v0  ;;  %146 = vst.msk [vmem:[%s322_s25 + $0xd8] sm:$0xff] %vm118_vm0, %v282_v0 }
  0x2f   : > { %147 = vst.msk [vmem:[%s322_s25 + $0xe0] sm:$0xff] %vm118_vm0, %v282_v0  ;;  %148 = vst.msk [vmem:[%s322_s25 + $0xe8] sm:$0xff] %vm118_vm0, %v282_v0 }
  0x30   : > { %149 = vst.msk [vmem:[%s322_s25 + $0xf0] sm:$0xff] %vm118_vm0, %v282_v0  ;;  %150 = vst.msk [vmem:[%s322_s25 + $0xf8] sm:$0xff] %vm118_vm0, %v282_v0 }
  0x31 PF: > { %p228_p12 = scmp.le.s32.totalorder %s411_s26, 0 }
  0x32   : > { %s277_s27 = smov (!%p228_p12), 0  }
  0x33   : > { %198 = sbr.rel (%p228_p12) target bundleno = 69 (0x45), region = 58 }
  0x3a LB: >> { %s157_s28 = sadd.s32 %s279_s27, %s317_s21  ;;  %s161_s30 = scalar_lea.vmem %s322_s25, %s279_s27  ;;  %vm162_vm1 = vcmask 286720   ;;  %s279_s27 = sphi %s277_s27, %s154_s27  }
  0x3b   : >> { %s158_s29 = sld [smem:[#allocation3 + %s157_s28]]  ;;  %s154_s27 = sadd.s32 1, %s279_s27  }
  0x3c   : >> { %p153_p13 = scmp.ge.s32.totalorder %s154_s27, %s411_s26 }
  0x3e   : > { %156 = sbr.rel (!%p153_p13) target bundleno = 58 (0x3a), region = 64 }
  0x41   : >> { %s159_s6 = scalar_lea.vmem %s404_s2, %s158_s29 }
  0x42   : >> { %v160_v1 = vld [vmem:[%s159_s6] sm:$0x1] }
  0x43   : >> { %163 = vst.msk [vmem:[%s161_s30] sm:$0x1] %vm162_vm1, %v160_v1 }
  0x45 PF: > { %s20_s19 = sadd.s32 1, %s275_s19  }
  0x46   : > { %p17_p0 = scmp.ge.s32.totalorder %s20_s19, 6  }
  0x48   :  { %19 = sbr.rel (!%p17_p0) target bundleno = 16 (0x10), region = 75 }

</bundles_post_ra>
